<compile_context>
chip_gen: v7x
topology: tpu7x:2x2x1
jax: 0.10.0
libtpu: 0.0.40
codegen_flags: <defaults>
</compile_context>

<pallas_src>
import math
from functools import partial

import jax
import jax.numpy as jnp
from jax import lax
from jax.experimental import pallas as pl
from jax.experimental.pallas import tpu as pltpu

# ---- Izhikevich hyper-parameters (module __init__ defaults), compile-time
# ---- constants folded into the VPU ops as immediates.
DT = 0.1
TAU_S = 10.0
TAU_W = 4.0
TAU_V = 4.0
THRESHOLD = -52.0
REST_POT = -62.0
RESET_POT = -62.0
REFRAC_LENGTH = 5.0
A0 = 1.0
B = 2.0
R = 0.001
CRITICAL_POT = 0.8
TRACE_DECAY = math.exp(-DT / TAU_S)        # compute_decay()

# Population layout: flat (ROWS, LANES) = 4096 neurons.  Lane-dense last dim;
# ROWS=32 keeps both the f32 (8,128) and int8 (32,128) tilings exact.
ROWS, LANES = 32, 128
T_STEPS = 8                                # fused simulation steps for rollout
N_STATE = 5                                # v, w, refrac_count, s, traces


def _izhikevich_update(x, v, w, rc, s, tr):
    """One Izhikevich.forward step, element-wise (pure jnp; f32 in/out)."""
    not_refrac = rc <= 0.0
    # compute_potential (gated by the refractory mask)
    dv = ((v - REST_POT) * (v - CRITICAL_POT) - R * w + R * x) * (DT / TAU_V)
    v = v + jnp.where(not_refrac, dv, 0.0)
    dw = (A0 * (v - REST_POT) - w + B * TAU_W * s) * (DT / TAU_W)
    w = w + jnp.where(not_refrac, dw, 0.0)
    # compute_spike
    spiked = v >= THRESHOLD
    # refractory_and_reset
    rc = jnp.where(spiked, REFRAC_LENGTH, rc - DT)
    v = jnp.where(spiked, RESET_POT, v)
    # NeuralPopulation.forward trace update (additive_spike_trace=False)
    tr = jnp.where(spiked, 1.0, tr * TRACE_DECAY)
    s = spiked.astype(jnp.float32)          # spikes kept as f32 0/1 (torch: bool)
    return v, w, rc, s, tr


# --------------------------- single-step kernel ---------------------------

def _izh_step_kernel(x_ref, st_ref, st_o):
    v, w, rc, s, tr = _izhikevich_update(
        x_ref[...], st_ref[0], st_ref[1], st_ref[2], st_ref[3], st_ref[4])
    st_o[0] = v
    st_o[1] = w
    st_o[2] = rc
    st_o[3] = s
    st_o[4] = tr


def izhikevich_step(x, state):
    """One module.forward step on the packed (5, ROWS, LANES) state.

    Grid-less: one block, no pipeline overhead; state updated in place.
    NOTE: for multi-step simulation use izhikevich_rollout, not a host loop.
    """
    return pl.pallas_call(
        _izh_step_kernel,
        out_shape=jax.ShapeDtypeStruct(state.shape, jnp.float32),
        input_output_aliases={1: 0},       # packed state updated in place
    )(x, state)


# ------------------------- time-fused rollout kernel ----------------------

def _izh_rollout_kernel(x_ref, st0_ref, s_seq_ref, st_ref, *, chunk, unroll):
    # Running state lives in the constant-index (VMEM-resident) output block;
    # initialize it from the packed initial state on the first chunk only.
    @pl.when(pl.program_id(0) == 0)
    def _():
        st_ref[...] = st0_ref[...]

    def body(t, carry):
        v, w, rc, s, tr = carry
        v, w, rc, s, tr = _izhikevich_update(x_ref[t], v, w, rc, s, tr)
        s_seq_ref[t] = s.astype(jnp.int8)   # narrow raster writeback (4x less BW)
        return (v, w, rc, s, tr)

    init = (st_ref[0], st_ref[1], st_ref[2], st_ref[3], st_ref[4])
    v, w, rc, s, tr = lax.fori_loop(0, chunk, body, init, unroll=unroll)

    st_ref[0] = v
    st_ref[1] = w
    st_ref[2] = rc
    st_ref[3] = s
    st_ref[4] = tr


def izhikevich_rollout(xs, state, *, chunk=None):
    """T fused forward steps.  xs: (T, ROWS, LANES); state: (5, ROWS, LANES).

    Returns (spike raster int8 (T, ROWS, LANES), final packed state).
    With chunk=None (default) the whole simulation runs in a single kernel
    invocation; for long T pass a chunk (e.g. 64-256) so xs streams through
    the BlockSpec pipeline while the state stays VMEM-resident.
    """
    t_steps, rows, lanes = xs.shape
    if chunk is None:
        chunk = t_steps                     # single invocation, zero grid steps lost
    assert t_steps % chunk == 0, "T must be a multiple of the time chunk"
    n_chunks = t_steps // chunk
    unroll = chunk <= 32                    # fully unroll short inner loops

    xs_spec = pl.BlockSpec((chunk, rows, lanes), lambda c: (c, 0, 0))
    st_spec = pl.BlockSpec((N_STATE, rows, lanes), lambda c: (0, 0, 0))  # resident

    return pl.pallas_call(
        partial(_izh_rollout_kernel, chunk=chunk, unroll=unroll),
        out_shape=(jax.ShapeDtypeStruct((t_steps, rows, lanes), jnp.int8),
                   jax.ShapeDtypeStruct((N_STATE, rows, lanes), jnp.float32)),
        grid=(n_chunks,),
        in_specs=[xs_spec, st_spec],
        out_specs=[xs_spec, st_spec],
        input_output_aliases={1: 1},        # packed state updated in place
        compiler_params=pltpu.CompilerParams(
            dimension_semantics=("arbitrary",)),   # time recurrence
    )(xs, state)


# --------------------------------- test -----------------------------------

def _reference_rollout(xs, v, w, rc, s, tr):
    spikes = []
    for t in range(xs.shape[0]):
        v, w, rc, s, tr = _izhikevich_update(xs[t], v, w, rc, s, tr)
        spikes.append(s)
    return jnp.stack(spikes), (v, w, rc, s, tr)


if __name__ == "__main__":
    key = jax.random.PRNGKey(0)
    k_x, k_v, k_w, k_rc, k_s, k_tr = jax.random.split(key, 6)

    # Deterministic inputs exercising refractory / spiking / decay branches.
    xs = jax.random.uniform(k_x, (T_STEPS, ROWS, LANES), jnp.float32, 0.0, 50.0)
    v0 = jax.random.uniform(k_v, (ROWS, LANES), jnp.float32, -70.0, -45.0)
    w0 = jax.random.uniform(k_w, (ROWS, LANES), jnp.float32, 0.0, 2.0)
    rc0 = jax.random.uniform(k_rc, (ROWS, LANES), jnp.float32, -0.3, 0.3)
    s0 = (jax.random.uniform(k_s, (ROWS, LANES)) < 0.2).astype(jnp.float32)
    tr0 = jax.random.uniform(k_tr, (ROWS, LANES), dtype=jnp.float32)
    state0 = jnp.stack([v0, w0, rc0, s0, tr0])          # packed (5, ROWS, LANES)

    # Pure-JAX references.
    ref_step = _izhikevich_update(xs[0], v0, w0, rc0, s0, tr0)
    ref_spikes, ref_final = _reference_rollout(xs, v0, w0, rc0, s0, tr0)
    jax.block_until_ready((ref_step, ref_spikes, ref_final))

    state_names = ("v", "w", "refrac", "s", "traces")

    # Single-step kernel (== one module.forward call).
    got_step = izhikevich_step(xs[0], state0)
    jax.block_until_ready(got_step)
    for i, name in enumerate(state_names):
        assert jnp.allclose(got_step[i], ref_step[i], atol=1e-4, rtol=1e-5), \
            f"step mismatch: {name}"

    # Time-fused rollout, single kernel invocation (chunk == T).
    got_spikes, got_final = izhikevich_rollout(xs, state0)
    jax.block_until_ready((got_spikes, got_final))
    assert jnp.array_equal(got_spikes, ref_spikes.astype(jnp.int8)), \
        "rollout mismatch: spikes"
    for i, name in enumerate(state_names):
        assert jnp.allclose(got_final[i], ref_final[i], atol=1e-4, rtol=1e-5), \
            f"rollout mismatch: {name}"

    # Time-chunked rollout (grid=(2,), state resident across chunks).
    got_spikes_c, got_final_c = izhikevich_rollout(xs, state0, chunk=4)
    jax.block_until_ready((got_spikes_c, got_final_c))
    assert jnp.array_equal(got_spikes_c, ref_spikes.astype(jnp.int8)), \
        "chunked rollout mismatch: spikes"
    for i, name in enumerate(state_names):
        assert jnp.allclose(got_final_c[i], ref_final[i], atol=1e-4, rtol=1e-5), \
            f"chunked rollout mismatch: {name}"

    print("KERNEL_OK")
</pallas_src>

<mosaic_0001>
module attributes {stable_mosaic.version = 11 : i64} {
  func.func @_izh_step_kernel(%arg0: memref<32x128xf32, #tpu.memory_space<vmem>>, %arg1: memref<5x32x128xf32, #tpu.memory_space<vmem>>, %arg2: memref<5x32x128xf32, #tpu.memory_space<vmem>>) attributes {dimension_semantics = [], scalar_prefetch = 0 : i64, scratch_operands = 0 : i64, tpu.core_type = #tpu.core_type<tc>} {
    %c0 = arith.constant 0 : index
    %c0_0 = arith.constant 0 : index
    %0 = vector.load %arg0[%c0, %c0_0] : memref<32x128xf32, #tpu.memory_space<vmem>>, vector<32x128xf32>
    %c0_1 = arith.constant 0 : index
    %c0_2 = arith.constant 0 : index
    %c0_3 = arith.constant 0 : index
    %1 = vector.load %arg1[%c0_1, %c0_2, %c0_3] : memref<5x32x128xf32, #tpu.memory_space<vmem>>, vector<1x32x128xf32>
    %2 = vector.shape_cast %1 : vector<1x32x128xf32> to vector<32x128xf32>
    %c1 = arith.constant 1 : index
    %c0_4 = arith.constant 0 : index
    %c0_5 = arith.constant 0 : index
    %3 = vector.load %arg1[%c1, %c0_4, %c0_5] : memref<5x32x128xf32, #tpu.memory_space<vmem>>, vector<1x32x128xf32>
    %4 = vector.shape_cast %3 : vector<1x32x128xf32> to vector<32x128xf32>
    %c2 = arith.constant 2 : index
    %c0_6 = arith.constant 0 : index
    %c0_7 = arith.constant 0 : index
    %5 = vector.load %arg1[%c2, %c0_6, %c0_7] : memref<5x32x128xf32, #tpu.memory_space<vmem>>, vector<1x32x128xf32>
    %6 = vector.shape_cast %5 : vector<1x32x128xf32> to vector<32x128xf32>
    %c3 = arith.constant 3 : index
    %c0_8 = arith.constant 0 : index
    %c0_9 = arith.constant 0 : index
    %7 = vector.load %arg1[%c3, %c0_8, %c0_9] : memref<5x32x128xf32, #tpu.memory_space<vmem>>, vector<1x32x128xf32>
    %8 = vector.shape_cast %7 : vector<1x32x128xf32> to vector<32x128xf32>
    %c4 = arith.constant 4 : index
    %c0_10 = arith.constant 0 : index
    %c0_11 = arith.constant 0 : index
    %9 = vector.load %arg1[%c4, %c0_10, %c0_11] : memref<5x32x128xf32, #tpu.memory_space<vmem>>, vector<1x32x128xf32>
    %10 = vector.shape_cast %9 : vector<1x32x128xf32> to vector<32x128xf32>
    %cst = arith.constant 0.000000e+00 : f32
    %11 = vector.broadcast %cst : f32 to vector<32x128xf32>
    %12 = arith.cmpf ole, %6, %11 : vector<32x128xf32>
    %cst_12 = arith.constant -6.200000e+01 : f32
    %13 = vector.broadcast %cst_12 : f32 to vector<32x128xf32>
    %14 = arith.subf %2, %13 : vector<32x128xf32>
    %cst_13 = arith.constant 8.000000e-01 : f32
    %15 = vector.broadcast %cst_13 : f32 to vector<32x128xf32>
    %16 = arith.subf %2, %15 : vector<32x128xf32>
    %17 = arith.mulf %14, %16 : vector<32x128xf32>
    %cst_14 = arith.constant 1.000000e-03 : f32
    %18 = vector.broadcast %cst_14 : f32 to vector<32x128xf32>
    %19 = arith.mulf %18, %4 : vector<32x128xf32>
    %20 = arith.subf %17, %19 : vector<32x128xf32>
    %cst_15 = arith.constant 1.000000e-03 : f32
    %21 = vector.broadcast %cst_15 : f32 to vector<32x128xf32>
    %22 = arith.mulf %21, %0 : vector<32x128xf32>
    %23 = arith.addf %20, %22 : vector<32x128xf32>
    %cst_16 = arith.constant 2.500000e-02 : f32
    %24 = vector.broadcast %cst_16 : f32 to vector<32x128xf32>
    %25 = arith.mulf %23, %24 : vector<32x128xf32>
    %cst_17 = arith.constant 0.000000e+00 : f32
    %26 = vector.broadcast %cst_17 : f32 to vector<32x128xf32>
    %27 = arith.select %12, %25, %26 : vector<32x128xi1>, vector<32x128xf32>
    %28 = arith.addf %2, %27 : vector<32x128xf32>
    %cst_18 = arith.constant -6.200000e+01 : f32
    %29 = vector.broadcast %cst_18 : f32 to vector<32x128xf32>
    %30 = arith.subf %28, %29 : vector<32x128xf32>
    %cst_19 = arith.constant 1.000000e+00 : f32
    %31 = vector.broadcast %cst_19 : f32 to vector<32x128xf32>
    %32 = arith.mulf %31, %30 : vector<32x128xf32>
    %33 = arith.subf %32, %4 : vector<32x128xf32>
    %cst_20 = arith.constant 8.000000e+00 : f32
    %34 = vector.broadcast %cst_20 : f32 to vector<32x128xf32>
    %35 = arith.mulf %34, %8 : vector<32x128xf32>
    %36 = arith.addf %33, %35 : vector<32x128xf32>
    %cst_21 = arith.constant 2.500000e-02 : f32
    %37 = vector.broadcast %cst_21 : f32 to vector<32x128xf32>
    %38 = arith.mulf %36, %37 : vector<32x128xf32>
    %cst_22 = arith.constant 0.000000e+00 : f32
    %39 = vector.broadcast %cst_22 : f32 to vector<32x128xf32>
    %40 = arith.select %12, %38, %39 : vector<32x128xi1>, vector<32x128xf32>
    %41 = arith.addf %4, %40 : vector<32x128xf32>
    %cst_23 = arith.constant -5.200000e+01 : f32
    %42 = vector.broadcast %cst_23 : f32 to vector<32x128xf32>
    %43 = arith.cmpf oge, %28, %42 : vector<32x128xf32>
    %cst_24 = arith.constant 1.000000e-01 : f32
    %44 = vector.broadcast %cst_24 : f32 to vector<32x128xf32>
    %45 = arith.subf %6, %44 : vector<32x128xf32>
    %cst_25 = arith.constant 5.000000e+00 : f32
    %46 = vector.broadcast %cst_25 : f32 to vector<32x128xf32>
    %47 = arith.select %43, %46, %45 : vector<32x128xi1>, vector<32x128xf32>
    %cst_26 = arith.constant -6.200000e+01 : f32
    %48 = vector.broadcast %cst_26 : f32 to vector<32x128xf32>
    %49 = arith.select %43, %48, %28 : vector<32x128xi1>, vector<32x128xf32>
    %cst_27 = arith.constant 0.990049839 : f32
    %50 = vector.broadcast %cst_27 : f32 to vector<32x128xf32>
    %51 = arith.mulf %10, %50 : vector<32x128xf32>
    %cst_28 = arith.constant 1.000000e+00 : f32
    %52 = vector.broadcast %cst_28 : f32 to vector<32x128xf32>
    %53 = arith.select %43, %52, %51 : vector<32x128xi1>, vector<32x128xf32>
    %54 = arith.extui %43 : vector<32x128xi1> to vector<32x128xi32>
    %55 = arith.sitofp %54 : vector<32x128xi32> to vector<32x128xf32>
    %c0_29 = arith.constant 0 : index
    %c0_30 = arith.constant 0 : index
    %c0_31 = arith.constant 0 : index
    %56 = vector.load %arg2[%c0_29, %c0_30, %c0_31] : memref<5x32x128xf32, #tpu.memory_space<vmem>>, vector<1x32x128xf32>
    %57 = vector.shape_cast %56 : vector<1x32x128xf32> to vector<32x128xf32>
    %58 = vector.shape_cast %49 : vector<32x128xf32> to vector<1x32x128xf32>
    tpu.vector_store %arg2[%c0_29, %c0_30, %c0_31], %58 {strides = array<i32>} : memref<5x32x128xf32, #tpu.memory_space<vmem>>, vector<1x32x128xf32>,
    %c1_32 = arith.constant 1 : index
    %c0_33 = arith.constant 0 : index
    %c0_34 = arith.constant 0 : index
    %59 = vector.load %arg2[%c1_32, %c0_33, %c0_34] : memref<5x32x128xf32, #tpu.memory_space<vmem>>, vector<1x32x128xf32>
    %60 = vector.shape_cast %59 : vector<1x32x128xf32> to vector<32x128xf32>
    %61 = vector.shape_cast %41 : vector<32x128xf32> to vector<1x32x128xf32>
    tpu.vector_store %arg2[%c1_32, %c0_33, %c0_34], %61 {strides = array<i32>} : memref<5x32x128xf32, #tpu.memory_space<vmem>>, vector<1x32x128xf32>,
    %c2_35 = arith.constant 2 : index
    %c0_36 = arith.constant 0 : index
    %c0_37 = arith.constant 0 : index
    %62 = vector.load %arg2[%c2_35, %c0_36, %c0_37] : memref<5x32x128xf32, #tpu.memory_space<vmem>>, vector<1x32x128xf32>
    %63 = vector.shape_cast %62 : vector<1x32x128xf32> to vector<32x128xf32>
    %64 = vector.shape_cast %47 : vector<32x128xf32> to vector<1x32x128xf32>
    tpu.vector_store %arg2[%c2_35, %c0_36, %c0_37], %64 {strides = array<i32>} : memref<5x32x128xf32, #tpu.memory_space<vmem>>, vector<1x32x128xf32>,
    %c3_38 = arith.constant 3 : index
    %c0_39 = arith.constant 0 : index
    %c0_40 = arith.constant 0 : index
    %65 = vector.load %arg2[%c3_38, %c0_39, %c0_40] : memref<5x32x128xf32, #tpu.memory_space<vmem>>, vector<1x32x128xf32>
    %66 = vector.shape_cast %65 : vector<1x32x128xf32> to vector<32x128xf32>
    %67 = vector.shape_cast %55 : vector<32x128xf32> to vector<1x32x128xf32>
    tpu.vector_store %arg2[%c3_38, %c0_39, %c0_40], %67 {strides = array<i32>} : memref<5x32x128xf32, #tpu.memory_space<vmem>>, vector<1x32x128xf32>,
    %c4_41 = arith.constant 4 : index
    %c0_42 = arith.constant 0 : index
    %c0_43 = arith.constant 0 : index
    %68 = vector.load %arg2[%c4_41, %c0_42, %c0_43] : memref<5x32x128xf32, #tpu.memory_space<vmem>>, vector<1x32x128xf32>
    %69 = vector.shape_cast %68 : vector<1x32x128xf32> to vector<32x128xf32>
    %70 = vector.shape_cast %53 : vector<32x128xf32> to vector<1x32x128xf32>
    tpu.vector_store %arg2[%c4_41, %c0_42, %c0_43], %70 {strides = array<i32>} : memref<5x32x128xf32, #tpu.memory_space<vmem>>, vector<1x32x128xf32>,
    return
  }
}

</mosaic_0001>

<bundles_post_ra>
// kernel: tpu_custom_call.1
= control target key start
LH: loop header
LB: loop body
LE: loop exit
PB: predicated region body
PF: predicated region fallthrough
CT: control target
= control target key end

     0   :  { %7 = vsyncpa [#allocation3], 0  ;;  %s419_s0 = inlined_call_operand.vmem [shape: f32[32,128], index: 0, kind: input, shape index: {}]   ;;  %s420_s1 = inlined_call_operand.hbm [shape: f32[5,32,128], index: 1, kind: input, shape index: {}, may-alias: {1,2}]   ;;  %s421_s2 = inlined_call_operand.hbm [shape: f32[5,32,128], index: 2, kind: output, shape index: {}, may-alias: {1,2}]  }
   0x1   :  { %8 = vsyncpa [#allocation4], 0  ;;  %s272_s9 = smov [#allocation2]   ;;  %s224_s13 = scalar_lea.hbm %s420_s1, 2560 }
   0x2   :  { %s16_s10 = sshll.u32 %s272_s9, 4  ;;  %p225_p0 = scmp.ne.s32.totalorder %s420_s1, %s224_s13  ;;  %s17_s10 = int_to_ptr.vmem [resolvable:$true] %s16_s10 }
   0x3   :  { %p228_p1 = scmp.lt.u32.totalorder %s224_s13, %s420_s1 }
   0x5   :  { %p230_p2 = pnand %p228_p1, %p225_p0 }
   0x7   :  { %233 = shalt.err (!%p230_p2)
}
   0x8   :  { %s234_s18 = scalar_lea.vmem %s17_s10, 2560  ;;  %p239_p4 = scmp.lt.s32.totalorder %s17_s10, %s17_s10 }
   0x9   :  { %p235_p3 = scmp.ne.s32.totalorder %s17_s10, %s234_s18  ;;  %p240_p5 = scmp.lt.s32.totalorder %s234_s18, %s234_s18 }
   0xb   :  { %p241_p6 = por %p240_p5, %p239_p4 }
   0xd   :  { %p242_p7 = pnand %p241_p6, %p235_p3 }
   0xf   :  { %245 = shalt.err (!%p242_p7)
}
  0x10   :  { %s273_s19 = smov 128   ;;  %s274_s20 = smov 8  }
  0x11   :  { %22 = dma.hbm_to_vmem [thread:$0]  %s420_s1, 2560, %s17_s10, [#allocation3], %s273_s19, %s273_s19, %s274_s20  }
  0x12   :  { %268 = dma.done.wait [#allocation3], 2560  }
  0x13   :  { %269 = vsyncadd [#allocation3], 4294964736  ;;  %v26_v0 = vld [vmem:[%s419_s0] sm:$0xff]  ;;  %v27_v8 = vld [vmem:[%s419_s0 + $0x8] sm:$0xff] }
  0x14   :  { %v30_v1 = vld [vmem:[#allocation2] sm:$0xff]  ;;  %v78_v7 = vmul.f32 0.001, %v26_v0  ;;  %v31_v9 = vld [vmem:[#allocation2 + $0x8] sm:$0xff]  ;;  %v79_v16 = vmul.f32 0.001, %v27_v8 }
  0x15   :  { %v310_v2 = vld [vmem:[#allocation2 + $0x20] sm:$0xff]  ;;  %v199_v4 = vadd.f32 62.0, %v30_v1  ;;  %v203_v5 = vadd.f32 -0.8, %v30_v1  ;;  %v319_v10 = vld [vmem:[#allocation2 + $0x28] sm:$0xff]  ;;  %v200_v13 = vadd.f32 62.0, %v31_v9 }
  0x16   :  { %v312_v3 = vld [vmem:[#allocation2 + $0x40] sm:$0xff]  ;;  %v70_v6 = vmul.f32 0.001, %v310_v2  ;;  %v321_v12 = vld [vmem:[#allocation2 + $0x48] sm:$0xff]  ;;  %v204_v14 = vadd.f32 -0.8, %v31_v9 }
  0x17   :  { %vm54_vm0 = vcmp.le.f32.partialorder %v312_v3, 0.0  ;;  %v66_v11 = vmul.f32 %v203_v5, %v199_v4  ;;  %v71_v15 = vmul.f32 0.001, %v319_v10  ;;  %vm55_vm1 = vcmp.le.f32.partialorder %v321_v12, 0.0  ;;  %v28_v17 = vld [vmem:[%s419_s0 + $0x10] sm:$0xff]  ;;  %v332_v25 = vld [vmem:[#allocation2 + $0x18] sm:$0xff] }
  0x18   :  { %v32_v18 = vld [vmem:[#allocation2 + $0x10] sm:$0xff]  ;;  %v67_v21 = vmul.f32 %v204_v14, %v200_v13  ;;  %v80_v27 = vmul.f32 0.001, %v28_v17  ;;  %v29_v28 = vld [vmem:[%s419_s0 + $0x18] sm:$0xff]  ;;  %v202_v34 = vadd.f32 62.0, %v332_v25  ;;  %v45_v35 = vld [vmem:[#allocation2 + $0x60] sm:$0xff] }
  0x19   :  { %v328_v19 = vld [vmem:[#allocation2 + $0x30] sm:$0xff]  ;;  %v74_v20 = vsub.f32 %v66_v11, %v70_v6  ;;  %v201_v23 = vadd.f32 62.0, %v32_v18  ;;  %v205_v24 = vadd.f32 -0.8, %v32_v18  ;;  %v338_v29 = vld [vmem:[#allocation2 + $0x38] sm:$0xff]  ;;  %v46_v36 = vld [vmem:[#allocation2 + $0x68] sm:$0xff] }
  0x1a   :  { %v330_v22 = vld [vmem:[#allocation2 + $0x50] sm:$0xff]  ;;  %v72_v26 = vmul.f32 0.001, %v328_v19  ;;  %v75_v31 = vsub.f32 %v67_v21, %v71_v15  ;;  %v340_v33 = vld [vmem:[#allocation2 + $0x58] sm:$0xff]  ;;  %v206_v37 = vadd.f32 -0.8, %v332_v25 }
  0x1b   :  { %v82_v30 = vadd.f32 %v78_v7, %v74_v20  ;;  %v68_v32 = vmul.f32 %v205_v24, %v201_v23  ;;  %vm56_vm2 = vcmp.le.f32.partialorder %v330_v22, 0.0  ;;  %vm57_vm3 = vcmp.le.f32.partialorder %v340_v33, 0.0  ;;  %v47_v43 = vld [vmem:[#allocation2 + $0x70] sm:$0xff]  ;;  %v48_v48 = vld [vmem:[#allocation2 + $0x78] sm:$0xff]  ;;  %v51_v21 = vld [vmem:[#allocation2 + $0x88] sm:$0xff]  ;;  %s276_s0 = smov [#allocation5]  }
  0x1c   :  { %v73_v38 = vmul.f32 0.001, %v338_v29  ;;  %v83_v40 = vadd.f32 %v79_v16, %v75_v31  ;;  %v106_v42 = vmul.f32 8.0, %v45_v35  ;;  %v69_v44 = vmul.f32 %v206_v37, %v202_v34  ;;  %v50_v16 = vld [vmem:[#allocation2 + $0x80] sm:$0xff]  ;;  %v52_v37 = vld [vmem:[#allocation2 + $0x90] sm:$0xff]  ;;  %s187_s30 = sshll.u32 %s276_s0, 4  ;;  %s188_s30 = int_to_ptr.vmem [resolvable:$true] %s187_s30 }
  0x1d   :  { %v86_v39 = vmul.f32 0.025, %v82_v30  ;;  %v76_v41 = vsub.f32 %v68_v32, %v72_v26  ;;  %v81_v45 = vmul.f32 0.001, %v29_v28  ;;  %v107_v46 = vmul.f32 8.0, %v46_v36  ;;  %s246_s3 = scalar_lea.vmem %s188_s30, 2560  ;;  %p251_p9 = scmp.lt.s32.totalorder %s188_s30, %s188_s30 }
  0x1e   :  { %v108_v47 = vmul.f32 8.0, %v47_v43  ;;  %v87_v50 = vmul.f32 0.025, %v83_v40  ;;  %v211_v52 = vadd.f32 -0.1, %v312_v3  ;;  %v77_v54 = vsub.f32 %v69_v44, %v73_v38  ;;  %p247_p8 = scmp.ne.s32.totalorder %s188_s30, %s246_s3  ;;  %p252_p10 = scmp.lt.s32.totalorder %s246_s3, %s246_s3 }
  0x1f   :  { %v90_v49 = vsel %vm54_vm0, %v86_v39, 0.0  ;;  %v84_v51 = vadd.f32 %v80_v27, %v76_v41  ;;  %v212_v55 = vadd.f32 -0.1, %v321_v12  ;;  %v213_v56 = vadd.f32 -0.1, %v330_v22  ;;  %v53_v41 = vld [vmem:[#allocation2 + $0x98] sm:$0xff] }
  0x20   :  { %v350_v53 = vadd.f32 %v90_v49, %v30_v1  ;;  %v91_v57 = vsel %vm55_vm1, %v87_v50, 0.0  ;;  %v356_v59 = vmul.f32 8.0, %v48_v48  ;;  %v214_v60 = vadd.f32 -0.1, %v340_v33  ;;  %p253_p11 = por %p252_p10, %p251_p9 }
  0x21   :  { %v88_v58 = vmul.f32 0.025, %v84_v51  ;;  %v95_v61 = vadd.f32 %v91_v57, %v31_v9  ;;  %v85_v62 = vadd.f32 %v81_v45, %v77_v54  ;;  %v275_v5 = vmov 0.0  }
  0x22   :  { %vm126_vm4 = vcmp.ge.f32.partialorder %v350_v53, -52.0  ;;  %v207_v63 = vadd.f32 62.0, %v350_v53  ;;  %v142_v32 = vmul.f32 0.99004984, %v50_v16  ;;  %v143_v36 = vmul.f32 0.99004984, %v51_v21  ;;  %p254_p12 = pnand %p253_p11, %p247_p8 }
  0x23   :  { %v138_v0 = vsel %vm126_vm4, -62.0, %v350_v53  ;;  %v92_v1 = vsel %vm56_vm2, %v88_v58, 0.0  ;;  %v134_v4 = vsel %vm126_vm4, 5.0, %v211_v52  ;;  %v215_v6 = vsel %vm126_vm4, 1.0, %v275_v5 }
  0x24   :  { %158 = vst [vmem:[#allocation5] sm:$0xff] %v138_v0  ;;  %vm127_vm5 = vcmp.ge.f32.partialorder %v95_v61, -52.0  ;;  %v96_v7 = vadd.f32 %v92_v1, %v32_v18  ;;  %v89_v8 = vmul.f32 0.025, %v85_v62  ;;  %v102_v9 = vsub.f32 %v207_v63, %v310_v2  ;;  %168 = vst [vmem:[#allocation5 + $0x40] sm:$0xff] %v134_v4 }
  0x25   :  { %173 = vst [vmem:[#allocation5 + $0x60] sm:$0xff] %v215_v6  ;;  %v139_v11 = vsel %vm127_vm5, -62.0, %v95_v61  ;;  %v208_v13 = vadd.f32 62.0, %v95_v61  ;;  %v135_v14 = vsel %vm127_vm5, 5.0, %v212_v55  ;;  %v216_v15 = vsel %vm127_vm5, 1.0, %v275_v5 }
  0x26   :  { %159 = vst [vmem:[#allocation5 + $0x8] sm:$0xff] %v139_v11  ;;  %vm128_vm6 = vcmp.ge.f32.partialorder %v96_v7, -52.0  ;;  %v93_v17 = vsel %vm57_vm3, %v89_v8, 0.0  ;;  %v110_v20 = vadd.f32 %v106_v42, %v102_v9  ;;  %v209_v18 = vadd.f32 62.0, %v96_v7  ;;  %169 = vst [vmem:[#allocation5 + $0x48] sm:$0xff] %v135_v14 }
  0x27   :  { %174 = vst [vmem:[#allocation5 + $0x68] sm:$0xff] %v216_v15  ;;  %v140_v23 = vsel %vm128_vm6, -62.0, %v96_v7  ;;  %v97_v24 = vadd.f32 %v93_v17, %v332_v25  ;;  %v103_v26 = vsub.f32 %v208_v13, %v319_v10  ;;  %v136_v27 = vsel %vm128_vm6, 5.0, %v213_v56 }
  0x28   :  { %160 = vst [vmem:[#allocation5 + $0x10] sm:$0xff] %v140_v23  ;;  %v114_v28 = vmul.f32 0.025, %v110_v20  ;;  %v104_v30 = vsub.f32 %v209_v18, %v328_v19  ;;  %170 = vst [vmem:[#allocation5 + $0x50] sm:$0xff] %v136_v27  ;;  %v217_v31 = vsel %vm128_vm6, 1.0, %v275_v5  ;;  %v146_v48 = vsel %vm126_vm4, 1.0, %v142_v32 }
  0x29   :  { %vm129_vm7 = vcmp.ge.f32.partialorder %v97_v24, -52.0  ;;  %v111_v34 = vadd.f32 %v107_v46, %v103_v26  ;;  %v210_v35 = vadd.f32 62.0, %v97_v24  ;;  %175 = vst [vmem:[#allocation5 + $0x70] sm:$0xff] %v217_v31  ;;  %v147_v3 = vsel %vm127_vm5, 1.0, %v143_v36  ;;  %178 = vst [vmem:[#allocation5 + $0x80] sm:$0xff] %v146_v48 }
  0x2a   :  { %v141_v25 = vsel %vm129_vm7, -62.0, %v97_v24  ;;  %v118_v38 = vsel %vm54_vm0, %v114_v28, 0.0  ;;  %v112_v39 = vadd.f32 %v108_v47, %v104_v30  ;;  %v137_v40 = vsel %vm129_vm7, 5.0, %v214_v60  ;;  %179 = vst [vmem:[#allocation5 + $0x88] sm:$0xff] %v147_v3 }
  0x2b   :  { %161 = vst [vmem:[#allocation5 + $0x18] sm:$0xff] %v141_v25  ;;  %v122_v42 = vadd.f32 %v118_v38, %v310_v2  ;;  %v115_v43 = vmul.f32 0.025, %v111_v34  ;;  %v105_v44 = vsub.f32 %v210_v35, %v338_v29  ;;  %171 = vst [vmem:[#allocation5 + $0x58] sm:$0xff] %v137_v40  ;;  %v218_v45 = vsel %vm129_vm7, 1.0, %v275_v5 }
  0x2c   :  { %v116_v46 = vmul.f32 0.025, %v112_v39  ;;  %176 = vst [vmem:[#allocation5 + $0x78] sm:$0xff] %v218_v45  ;;  %v144_v47 = vmul.f32 0.99004984, %v52_v37 }
  0x2d   :  { %163 = vst [vmem:[#allocation5 + $0x20] sm:$0xff] %v122_v42  ;;  %v119_v49 = vsel %vm55_vm1, %v115_v43, 0.0  ;;  %v113_v2 = vadd.f32 %v356_v59, %v105_v44  ;;  %v145_v50 = vmul.f32 0.99004984, %v53_v41 }
  0x2e   :  { %v123_v51 = vadd.f32 %v119_v49, %v319_v10  ;;  %v120_v52 = vsel %vm56_vm2, %v116_v46, 0.0  ;;  %v148_v53 = vsel %vm128_vm6, 1.0, %v144_v47 }
  0x2f   :  { %v124_v54 = vadd.f32 %v120_v52, %v328_v19  ;;  %v117_v55 = vmul.f32 0.025, %v113_v2  ;;  %180 = vst [vmem:[#allocation5 + $0x90] sm:$0xff] %v148_v53  ;;  %v149_v56 = vsel %vm129_vm7, 1.0, %v145_v50 }
  0x30   :  { %164 = vst [vmem:[#allocation5 + $0x28] sm:$0xff] %v123_v51  ;;  %181 = vst [vmem:[#allocation5 + $0x98] sm:$0xff] %v149_v56 }
  0x31   :  { %165 = vst [vmem:[#allocation5 + $0x30] sm:$0xff] %v124_v54  ;;  %v121_v12 = vsel %vm57_vm3, %v117_v55, 0.0 }
  0x32   :  { %v125_v10 = vadd.f32 %v121_v12, %v338_v29 }
  0x34   :  { %166 = vst [vmem:[#allocation5 + $0x38] sm:$0xff] %v125_v10 }
  0x35   :  { %257 = shalt.err (!%p254_p12)
}
  0x36   :  { %s258_s6 = scalar_lea.hbm %s421_s2, 2560 }
  0x37   :  { %p259_p13 = scmp.ne.s32.totalorder %s421_s2, %s258_s6  ;;  %p262_p0 = scmp.lt.u32.totalorder %s258_s6, %s421_s2 }
  0x39   :  { %p264_p1 = pnand %p262_p0, %p259_p13 }
  0x3b   :  { %267 = shalt.err (!%p264_p1)
}
  0x3c   :  { %193 = dma.vmem_to_hbm [thread:$0]  %s188_s30, 2560, %s421_s2, [#allocation4], %s273_s19, %s273_s19, %s274_s20  }
  0x3d   :  { %270 = dma.done.wait [#allocation4], 2560  }
  0x3e   :  { %271 = vsyncadd [#allocation4], 4294964736 }
  0x3f   :  { %197 = vsyncpa [#allocation3], 1 }
  0x40   :  { %198 = vsyncpa [#allocation4], 1 }

</bundles_post_ra>
